<compile_context>
chip_gen: v7x
topology: tpu7x:2x2x1
jax: 0.10.0
libtpu: 0.0.40
codegen_flags: <defaults>
</compile_context>

<pallas_src>
import functools

import jax
import jax.numpy as jnp
from jax.experimental import pallas as pl
from jax.experimental.pallas import tpu as pltpu


# --------------------------------------------------------------------------
# Kernels (one grid step = one (tm, tn) output tile, whole-K reduction)
# --------------------------------------------------------------------------
def _hidden_layer_kernel(x_ref, w_ref, b_ref, m_ref, o_ref):
    """out = dropout(relu((x @ W + b) / 1000), p=0.5)

    The /1000 scale and the dropout 1/(1-p)=2 rescale are pre-folded into the
    mask values (m in {0, 2e-3}), so the epilogue is relu(acc + b) * m.
    """
    acc = jnp.dot(x_ref[...], w_ref[...], preferred_element_type=jnp.float32)
    a = acc + b_ref[...]                       # bias is fp32
    o_ref[...] = (jnp.maximum(a, 0.0) * m_ref[...]).astype(o_ref.dtype)


def _final_layer_kernel(z_size, x_ref, w_ref, b_ref, o_ref):
    """a = x @ W5 + b5 over the whole 2Z width in one lane-dense tile.
    cols <  z_size : relu(a / 1000)
    cols >= z_size : sigmoid(a / 1000) * 0.299 + 0.001
    """
    acc = jnp.dot(x_ref[...], w_ref[...], preferred_element_type=jnp.float32)
    a = (acc + b_ref[...]) * 1e-3
    cols = jax.lax.broadcasted_iota(jnp.int32, a.shape, 1)  # absolute: one N tile
    z_loc = jnp.maximum(a, 0.0)
    z_scale = jax.nn.sigmoid(a) * 0.299 + 0.001
    o_ref[...] = jnp.where(cols < z_size, z_loc, z_scale).astype(o_ref.dtype)


# --------------------------------------------------------------------------
# pallas_call wrapper for one fused linear layer
# --------------------------------------------------------------------------
def _pick_tile(dim, target):
    """Largest 128-multiple <= target dividing dim; full dim as safe fallback."""
    if dim <= target or dim % 128 != 0:
        return dim
    t = (min(target, dim) // 128) * 128
    while t >= 128 and dim % t != 0:
        t -= 128
    return t if t >= 128 else dim


def _fused_linear(kernel_fn, x, w, b, mask=None, *, out_dtype,
                  tm_target=256, tn_target=1024):
    """Tiled, pipelined y = epilogue(x @ w + b [, mask]).

    Grid is (M//tm, N//tn), both axes parallel (megacore-shardable); the whole
    K reduction happens inside one grid step.  At the real padded widths
    (2048/4096) a (K, 1024) bf16 weight slab is 8 MiB, so double-buffering
    stays under the 40 MiB VMEM limit even on v7x (64 MiB physical); v5e/v6e
    can sweep tn / the limit upward.
    """
    M, K = x.shape
    K2, N = w.shape
    assert K == K2 and b.shape == (1, N)

    tm = _pick_tile(M, tm_target)
    tn = _pick_tile(N, tn_target)
    grid = (M // tm, N // tn)

    in_specs = [
        pl.BlockSpec((tm, K), lambda i, j: (i, 0)),   # activations (bf16)
        pl.BlockSpec((K, tn), lambda i, j: (0, j)),   # weights (bf16), streamed
        pl.BlockSpec((1, tn), lambda i, j: (0, j)),   # bias (fp32)
    ]
    inputs = [x, w, b]
    if mask is not None:                               # dropout mask tile (fp32)
        in_specs.append(pl.BlockSpec((tm, tn), lambda i, j: (i, j)))
        inputs.append(mask)

    return pl.pallas_call(
        kernel_fn,
        out_shape=jax.ShapeDtypeStruct((M, N), out_dtype),
        grid=grid,
        in_specs=in_specs,
        out_specs=pl.BlockSpec((tm, tn), lambda i, j: (i, j)),
        compiler_params=pltpu.CompilerParams(
            dimension_semantics=("parallel", "parallel"),
            vmem_limit_bytes=40 * 1024 * 1024,   # safe on v7x; raise on v5e/v6e
        ),
    )(*inputs)


# --------------------------------------------------------------------------
# Encoder forward
# --------------------------------------------------------------------------
def encoder_forward(params, x, dropout_masks):
    """x: (M, obj_h*obj_w); flatten any (batch, num_objects, ...) into M first
    so the same weight stream is amortized over more rows."""
    w1, b1, w2, b2, w3, b3, w5, b5 = params
    m1, m2, m3 = dropout_masks

    x = x.astype(jnp.bfloat16)   # cast once here, not per grid step in-kernel
    h = _fused_linear(_hidden_layer_kernel, x, w1, b1, m1, out_dtype=jnp.bfloat16)
    h = _fused_linear(_hidden_layer_kernel, h, w2, b2, m2, out_dtype=jnp.bfloat16)
    h = _fused_linear(_hidden_layer_kernel, h, w3, b3, m3, out_dtype=jnp.bfloat16)

    z = w5.shape[1] // 2
    a = _fused_linear(functools.partial(_final_layer_kernel, z),
                      h, w5, b5, out_dtype=jnp.float32,
                      tn_target=w5.shape[1])   # single lane-dense N tile
    # Slice at the 128-aligned Z boundary (layout-free when Z % 128 == 0).
    return a[:, :z], a[:, z:]


def make_dropout_masks(key, shapes, p=0.5, training=True):
    """Masks in {0, (1/(1-p)) * 1e-3}: dropout rescale and /1000 pre-folded.

    Eval mode (training=False): all-keep masks with value 1e-3 (no dropout,
    just the /1000) -- never reuse training masks for eval.
    """
    if not training:
        return [jnp.full(s, 1e-3, jnp.float32) for s in shapes]
    keys = jax.random.split(key, len(shapes))
    keep_val = jnp.float32((1.0 / (1.0 - p)) * 1e-3)
    masks = []
    for k, s in zip(keys, shapes):
        keep = jax.random.bernoulli(k, 1.0 - p, s)
        masks.append(jnp.where(keep, keep_val, jnp.float32(0.0)))
    return masks


# --------------------------------------------------------------------------
# Pure-JAX reference (mirrors the kernel's bf16 inter-layer casts)
# --------------------------------------------------------------------------
def _ref_forward(params, x, masks, z):
    w1, b1, w2, b2, w3, b3, w5, b5 = params
    m1, m2, m3 = masks

    def layer(h, w, b, m):
        a = jnp.dot(h.astype(jnp.float32), w.astype(jnp.float32)) + b
        out = jnp.maximum(a, 0.0) * m
        return out.astype(jnp.bfloat16).astype(jnp.float32)

    h = layer(x.astype(jnp.bfloat16), w1, b1, m1)
    h = layer(h, w2, b2, m2)
    h = layer(h, w3, b3, m3)
    a = (jnp.dot(h, w5.astype(jnp.float32)) + b5) * 1e-3
    z_loc = jnp.maximum(a[:, :z], 0.0)
    z_scale = jax.nn.sigmoid(a[:, z:]) * 0.299 + 0.001
    return z_loc, z_scale


# --------------------------------------------------------------------------
# Demo
# --------------------------------------------------------------------------
if __name__ == "__main__":
    # Small, 128-aligned stand-ins for the real 2000/4000/2000 -> 2048/4096
    # padded widths.  M = batch x num_objects, flattened.
    M = 16
    OBJ_H, OBJ_W = 16, 16
    D_IN = OBJ_H * OBJ_W
    H1, H2, H3 = 256, 512, 256
    Z = 128                       # z_what_latent_size

    key = jax.random.PRNGKey(0)
    k_params, k_x, k_drop = jax.random.split(key, 3)
    pkeys = jax.random.split(k_params, 8)

    def linear_init(kw, kb, fan_in, fan_out):
        # PyTorch nn.Linear default: U(-1/sqrt(fan_in), 1/sqrt(fan_in)).
        bound = 1.0 / float(fan_in) ** 0.5
        w = jax.random.uniform(kw, (fan_in, fan_out), jnp.float32, -bound, bound)
        b = jax.random.uniform(kb, (1, fan_out), jnp.float32, -bound, bound)
        # Ship weights as bf16 (fp32 MXU accumulation in-kernel); biases fp32.
        return w.astype(jnp.bfloat16), b

    w1, b1 = linear_init(pkeys[0], pkeys[1], D_IN, H1)
    w2, b2 = linear_init(pkeys[2], pkeys[3], H1, H2)
    w3, b3 = linear_init(pkeys[4], pkeys[5], H2, H3)
    w5, b5 = linear_init(pkeys[6], pkeys[7], H3, 2 * Z)
    params = (w1, b1, w2, b2, w3, b3, w5, b5)

    x = jax.random.uniform(k_x, (M, D_IN), jnp.float32)
    masks = make_dropout_masks(k_drop, [(M, H1), (M, H2), (M, H3)],
                               p=0.5, training=True)

    z_loc, z_scale = encoder_forward(params, x, masks)
    jax.block_until_ready((z_loc, z_scale))

    # Shape / range checks (match the module's output constraints).
    assert z_loc.shape == (M, Z) and z_scale.shape == (M, Z)
    assert bool(jnp.all(z_loc >= 0.0))
    assert bool(jnp.all((z_scale >= 0.001) & (z_scale <= 0.3)))

    # Numerical check against a pure-JAX reference using the same bf16 params.
    ref_loc, ref_scale = _ref_forward(params, x, masks, Z)
    assert bool(jnp.allclose(z_loc, ref_loc, rtol=1e-2, atol=1e-6))
    assert bool(jnp.allclose(z_scale, ref_scale, rtol=1e-2, atol=1e-4))

    print("KERNEL_OK")
</pallas_src>

<mosaic_0001>
module attributes {stable_mosaic.version = 11 : i64} {
  func.func @_hidden_layer_kernel(%arg0: i32, %arg1: i32, %arg2: memref<16x256xbf16, #tpu.memory_space<vmem>>, %arg3: memref<256x256xbf16, #tpu.memory_space<vmem>>, %arg4: memref<1x256xf32, #tpu.memory_space<vmem>>, %arg5: memref<16x256xf32, #tpu.memory_space<vmem>>, %arg6: memref<16x256xbf16, #tpu.memory_space<vmem>>) attributes {dimension_semantics = [#tpu.dimension_semantics<parallel>, #tpu.dimension_semantics<parallel>], iteration_bounds = array<i64: 1, 1>, scalar_prefetch = 0 : i64, scratch_operands = 0 : i64, tpu.core_type = #tpu.core_type<tc>, window_params = [{transform_indices = @transform_0, window_bounds = array<i64: 16, 256>}, {transform_indices = @transform_1, window_bounds = array<i64: 256, 256>}, {transform_indices = @transform_2, window_bounds = array<i64: 1, 256>}, {transform_indices = @transform_3, window_bounds = array<i64: 16, 256>}, {transform_indices = @transform_4, window_bounds = array<i64: 16, 256>}]} {
    %c0 = arith.constant 0 : index
    %c0_0 = arith.constant 0 : index
    %0 = vector.load %arg2[%c0, %c0_0] : memref<16x256xbf16, #tpu.memory_space<vmem>>, vector<16x256xbf16>
    %c0_1 = arith.constant 0 : index
    %c0_2 = arith.constant 0 : index
    %1 = vector.load %arg3[%c0_1, %c0_2] : memref<256x256xbf16, #tpu.memory_space<vmem>>, vector<256x256xbf16>
    %cst = arith.constant dense<0.000000e+00> : vector<16x256xf32>
    %2 = tpu.matmul %0, %1, %cst {dimension_numbers = #tpu.dot_dimension_numbers<[1], [0], [0], [1], [0, 0, 1, 1], [], []>} : vector<16x256xbf16>, vector<256x256xbf16>, vector<16x256xf32> -> vector<16x256xf32>
    %c0_3 = arith.constant 0 : index
    %c0_4 = arith.constant 0 : index
    %3 = vector.load %arg4[%c0_3, %c0_4] : memref<1x256xf32, #tpu.memory_space<vmem>>, vector<1x256xf32>
    %4 = vector.broadcast %3 : vector<1x256xf32> to vector<16x256xf32>
    %5 = arith.addf %2, %4 : vector<16x256xf32>
    %cst_5 = arith.constant 0.000000e+00 : f32
    %6 = vector.broadcast %cst_5 : f32 to vector<16x256xf32>
    %7 = arith.maximumf %5, %6 : vector<16x256xf32>
    %c0_6 = arith.constant 0 : index
    %c0_7 = arith.constant 0 : index
    %8 = vector.load %arg5[%c0_6, %c0_7] : memref<16x256xf32, #tpu.memory_space<vmem>>, vector<16x256xf32>
    %9 = arith.mulf %7, %8 : vector<16x256xf32>
    %10 = arith.truncf %9 : vector<16x256xf32> to vector<16x256xbf16>
    %c0_8 = arith.constant 0 : index
    %c0_9 = arith.constant 0 : index
    %11 = vector.load %arg6[%c0_8, %c0_9] : memref<16x256xbf16, #tpu.memory_space<vmem>>, vector<16x256xbf16>
    tpu.vector_store %arg6[%c0_8, %c0_9], %10 {strides = array<i32>} : memref<16x256xbf16, #tpu.memory_space<vmem>>, vector<16x256xbf16>,
    return
  }
  func.func @transform_0(%arg0: i32, %arg1: i32) -> (i32, i32) {
    %c0_i32 = arith.constant 0 : i32
    %c0_i32_0 = arith.constant 0 : i32
    return %arg0, %c0_i32 : i32, i32
  }
  func.func @transform_1(%arg0: i32, %arg1: i32) -> (i32, i32) {
    %c0_i32 = arith.constant 0 : i32
    %c0_i32_0 = arith.constant 0 : i32
    return %c0_i32, %arg1 : i32, i32
  }
  func.func @transform_2(%arg0: i32, %arg1: i32) -> (i32, i32) {
    %c0_i32 = arith.constant 0 : i32
    %c0_i32_0 = arith.constant 0 : i32
    return %c0_i32, %arg1 : i32, i32
  }
  func.func @transform_3(%arg0: i32, %arg1: i32) -> (i32, i32) {
    %c0_i32 = arith.constant 0 : i32
    return %arg0, %arg1 : i32, i32
  }
  func.func @transform_4(%arg0: i32, %arg1: i32) -> (i32, i32) {
    %c0_i32 = arith.constant 0 : i32
    return %arg0, %arg1 : i32, i32
  }
}

</mosaic_0001>

<bundles_post_ra>
// kernel: tpu_custom_call.1
= control target key start
LH: loop header
LB: loop body
LE: loop exit
PB: predicated region body
PF: predicated region fallthrough
CT: control target
= control target key end

     0   :  { %9 = vsyncpa [#allocation3], 0  ;;  %s653_s0 = inlined_call_operand.hbm [shape: bf16[16,256], index: 0, kind: input, shape index: {}]   ;;  %s654_s1 = inlined_call_operand.hbm [shape: bf16[256,256], index: 1, kind: input, shape index: {}]   ;;  %s655_s2 = inlined_call_operand.vmem [shape: f32[1,256], index: 2, kind: input, shape index: {}]   ;;  %s656_s3 = inlined_call_operand.hbm [shape: f32[16,256], index: 3, kind: input, shape index: {}]   ;;  %s657_s4 = inlined_call_operand.hbm [shape: bf16[16,256], index: 4, kind: output, shape index: {}]  }
   0x1   :  { %10 = vsyncpa [#allocation6], 0 }
   0x2   :  { %11 = vsyncpa [#allocation4], 0  ;;  %s553_s15 = smov [#allocation5]   ;;  %s554_s17 = smov [#allocation2]  }
   0x3   :  { %s29_s16 = sshll.u32 %s553_s15, 4  ;;  %s17_s18 = sshll.u32 %s554_s17, 4  ;;  %s30_s16 = int_to_ptr.vmem [resolvable:$true] %s29_s16  ;;  %s586_s18 = int_to_ptr.vmem [resolvable:$true] %s17_s18 }
   0x4   :  { %s459_s21 = scalar_lea.hbm %s654_s1, 4096 }
   0x5   :  { %p460_p0 = scmp.ne.s32.totalorder %s654_s1, %s459_s21  ;;  %p463_p1 = scmp.lt.u32.totalorder %s459_s21, %s654_s1 }
   0x7   :  { %p465_p2 = pnand %p463_p1, %p460_p0 }
   0x9   :  { %468 = shalt.err (!%p465_p2)
}
   0xa   :  { %s469_s26 = scalar_lea.vmem %s30_s16, 4096  ;;  %p474_p4 = scmp.lt.s32.totalorder %s30_s16, %s30_s16 }
   0xb   :  { %p470_p3 = scmp.ne.s32.totalorder %s30_s16, %s469_s26  ;;  %p475_p5 = scmp.lt.s32.totalorder %s469_s26, %s469_s26 }
   0xd   :  { %p476_p6 = por %p475_p5, %p474_p4 }
   0xf   :  { %p477_p7 = pnand %p476_p6, %p470_p3 }
  0x11   :  { %480 = shalt.err (!%p477_p7)
}
  0x12   :  { %s555_s27 = smov 128   ;;  %s556_s28 = smov 8  }
  0x13   :  { %35 = dma.hbm_to_vmem [thread:$0]  %s654_s1, 4096, %s30_s16, [#allocation6], %s555_s27, %s555_s27, %s556_s28  }
  0x14   :  { %s481_s7 = scalar_lea.hbm %s653_s0, 256 }
  0x15   :  { %p482_p8 = scmp.ne.s32.totalorder %s653_s0, %s481_s7  ;;  %p485_p9 = scmp.lt.u32.totalorder %s481_s7, %s653_s0 }
  0x17   :  { %p487_p10 = pnand %p485_p9, %p482_p8 }
  0x19   :  { %490 = shalt.err (!%p487_p10)
}
  0x1a   :  { %s491_s12 = scalar_lea.vmem %s586_s18, 256  ;;  %p496_p12 = scmp.lt.s32.totalorder %s586_s18, %s586_s18 }
  0x1b   :  { %p492_p11 = scmp.ne.s32.totalorder %s586_s18, %s491_s12  ;;  %p497_p13 = scmp.lt.s32.totalorder %s491_s12, %s491_s12 }
  0x1d   :  { %p498_p0 = por %p497_p13, %p496_p12 }
  0x1f   :  { %p499_p1 = pnand %p498_p0, %p492_p11 }
  0x21   :  { %502 = shalt.err (!%p499_p1)
}
  0x22   :  { %23 = dma.hbm_to_vmem [thread:$0]  %s653_s0, 256, %s586_s18, [#allocation3], %s555_s27, %s555_s27, %s556_s28  }
  0x23   :  { %s557_s14 = smov [#allocation7]   ;;  %s503_s19 = scalar_lea.hbm %s656_s3, 512 }
  0x24   :  { %s43_s15 = sshll.u32 %s557_s14, 4  ;;  %p504_p2 = scmp.ne.s32.totalorder %s656_s3, %s503_s19  ;;  %s44_s15 = int_to_ptr.vmem [resolvable:$true] %s43_s15 }
  0x25   :  { %p507_p3 = scmp.lt.u32.totalorder %s503_s19, %s656_s3 }
  0x27   :  { %p509_p4 = pnand %p507_p3, %p504_p2 }
  0x29   :  { %512 = shalt.err (!%p509_p4)
}
  0x2a   :  { %s513_s24 = scalar_lea.vmem %s44_s15, 512  ;;  %p518_p6 = scmp.lt.s32.totalorder %s44_s15, %s44_s15 }
  0x2b   :  { %p514_p5 = scmp.ne.s32.totalorder %s44_s15, %s513_s24  ;;  %p519_p7 = scmp.lt.s32.totalorder %s513_s24, %s513_s24 }
  0x2d   :  { %p520_p8 = por %p519_p7, %p518_p6 }
  0x2f   :  { %p521_p9 = pnand %p520_p8, %p514_p5 }
  0x31   :  { %524 = shalt.err (!%p521_p9)
}
  0x32   :  { %s558_s0 = smov 256   ;;  %s559_s18 = smov 16  }
  0x33   :  { %49 = dma.hbm_to_vmem [thread:$0]  %s656_s3, 512, %s44_s15, [#allocation6], %s558_s0, %s558_s0, %s559_s18  }
  0x34   :  { %547 = dma.done.wait [#allocation3], 256  }
  0x35   :  { %548 = vsyncadd [#allocation3], 4294967040 }
  0x36   :  { %549 = dma.done.wait [#allocation6], 4608  }
  0x37   :  { %550 = vsyncadd [#allocation6], 4294962688  ;;  %v408_v0 = vld [vmem:[#allocation5 + $0x4] ss:$8 sps:$4 sm:$0xff]   ;;  %v410_v1 = vld [vmem:[#allocation5] ss:$8 sps:$4 sm:$0xff]   ;;  %v95_v34 = vlaneseq }
  0x38   :  { %275 = vmatprep.subr.bf16.mxu0 %v408_v0  ;;  %v411_v2 = vld [vmem:[#allocation5 + $0x14] ss:$8 sps:$4 sm:$0xff]   ;;  %v413_v3 = vld [vmem:[#allocation5 + $0x10] ss:$8 sps:$4 sm:$0xff]   ;;  %v414_v4 = vld [vmem:[#allocation5 + $0x24] ss:$8 sps:$4 sm:$0xff]  }
  0x39   :  { %276 = vmatpush1.bf16.msra.mxu0 %v410_v1  ;;  %v416_v5 = vld [vmem:[#allocation5 + $0x20] ss:$8 sps:$4 sm:$0xff]   ;;  %v417_v6 = vld [vmem:[#allocation5 + $0x34] ss:$8 sps:$4 sm:$0xff]   ;;  %v419_v7 = vld [vmem:[#allocation5 + $0x30] ss:$8 sps:$4 sm:$0xff]  }
  0x3a   :  { %277 = vmatprep.subr.bf16.mxu0 %v411_v2  ;;  %v420_v8 = vld [vmem:[#allocation5 + $0x44] ss:$8 sps:$4 sm:$0xff]   ;;  %v422_v9 = vld [vmem:[#allocation5 + $0x40] ss:$8 sps:$4 sm:$0xff]   ;;  %v423_v10 = vld [vmem:[#allocation5 + $0x54] ss:$8 sps:$4 sm:$0xff]  }
  0x3b   :  { %v425_v11 = vld [vmem:[#allocation5 + $0x50] ss:$8 sps:$4 sm:$0xff]   ;;  %v426_v12 = vld [vmem:[#allocation5 + $0x64] ss:$8 sps:$4 sm:$0xff]   ;;  %v458_v13 = vld [vmem:[#allocation2 + $0x4] ss:$8 sps:$4 sm:$0xff]  }
  0x3c   :  { %v428_v14 = vld [vmem:[#allocation5 + $0x60] ss:$8 sps:$4 sm:$0xff]   ;;  %v429_v15 = vld [vmem:[#allocation5 + $0x74] ss:$8 sps:$4 sm:$0xff]   ;;  %307 = vmatprep.mubr.bf16.mxu0 %v458_v13  ;;  %v431_v16 = vld [vmem:[#allocation5 + $0x70] ss:$8 sps:$4 sm:$0xff]  }
  0x3d   :  { %278 = vmatpush1.bf16.msra.mxu0 %v413_v3  ;;  %v432_v17 = vld [vmem:[#allocation5 + $0x84] ss:$8 sps:$4 sm:$0xff]   ;;  %v434_v18 = vld [vmem:[#allocation5 + $0x80] ss:$8 sps:$4 sm:$0xff]   ;;  %v435_v19 = vld [vmem:[#allocation5 + $0x94] ss:$8 sps:$4 sm:$0xff]  }
  0x3e   :  { %279 = vmatprep.subr.bf16.mxu0 %v414_v4  ;;  %v437_v20 = vld [vmem:[#allocation5 + $0x90] ss:$8 sps:$4 sm:$0xff]   ;;  %v438_v21 = vld [vmem:[#allocation5 + $0xa4] ss:$8 sps:$4 sm:$0xff]   ;;  %v440_v22 = vld [vmem:[#allocation5 + $0xa0] ss:$8 sps:$4 sm:$0xff]  }
  0x3f   :  { %v441_v23 = vld [vmem:[#allocation5 + $0xb4] ss:$8 sps:$4 sm:$0xff]   ;;  %v443_v24 = vld [vmem:[#allocation5 + $0xb0] ss:$8 sps:$4 sm:$0xff]   ;;  %v444_v25 = vld [vmem:[#allocation5 + $0xc4] ss:$8 sps:$4 sm:$0xff]  }
  0x40   :  { %v446_v26 = vld [vmem:[#allocation5 + $0xc0] ss:$8 sps:$4 sm:$0xff]   ;;  %v447_v27 = vld [vmem:[#allocation5 + $0xd4] ss:$8 sps:$4 sm:$0xff]   ;;  %v449_v28 = vld [vmem:[#allocation5 + $0xd0] ss:$8 sps:$4 sm:$0xff]  }
  0x41   :  { %280 = vmatpush1.bf16.msra.mxu0 %v416_v5  ;;  %v450_v29 = vld [vmem:[#allocation5 + $0xe4] ss:$8 sps:$4 sm:$0xff]   ;;  %v452_v30 = vld [vmem:[#allocation5 + $0xe0] ss:$8 sps:$4 sm:$0xff]   ;;  %v453_v31 = vld [vmem:[#allocation5 + $0xf4] ss:$8 sps:$4 sm:$0xff]  }
  0x42   :  { %281 = vmatprep.subr.bf16.mxu0 %v417_v6  ;;  %v455_v32 = vld [vmem:[#allocation5 + $0xf0] ss:$8 sps:$4 sm:$0xff]   ;;  %v96_v35 = vshrl.u32 %v95_v34, 7  ;;  %v322_v44 = vld [vmem:[#allocation7] sm:$0xff]  ;;  %v323_v48 = vld [vmem:[#allocation7 + $0x8] sm:$0xff] }
  0x43   :  { %v456_v33 = vld [vmem:[#allocation2] ss:$8 sps:$4 sm:$0xff]  }
  0x44   :  { %v97_v36 = vsub.s32 0, %v96_v35  ;;  %v93_v37 = vld [vmem:[%s655_s2] sm:$0x3]  ;;  %v101_v38 = vsub.s32 1, %v96_v35  ;;  %v325_v56 = vld [vmem:[#allocation7 + $0x18] sm:$0xff]  ;;  %s560_s2 = smov [#allocation8]  }
  0x45   :  { %282 = vmatpush1.bf16.msra.mxu0 %v419_v7  ;;  %v324_v52 = vld [vmem:[#allocation7 + $0x10] sm:$0xff]  ;;  %s349_s30 = sshll.u32 %s560_s2, 4  ;;  %s350_s30 = int_to_ptr.vmem [resolvable:$true] %s349_s30 }
  0x46   :  { %283 = vmatprep.subr.bf16.mxu0 %v420_v8  ;;  %v98_v39 = vrot.slane %v93_v37, %v97_v36  ;;  %v102_v40 = vrot.slane %v93_v37, %v101_v38  ;;  %s525_s5 = scalar_lea.vmem %s350_s30, 256  ;;  %p530_p11 = scmp.lt.s32.totalorder %s350_s30, %s350_s30 }
  0x47   :  { %p526_p10 = scmp.ne.s32.totalorder %s350_s30, %s525_s5  ;;  %p531_p12 = scmp.lt.s32.totalorder %s525_s5, %s525_s5 }
  0x49   :  { %284 = vmatpush1.bf16.msra.mxu0 %v422_v9  ;;  %p532_p13 = por %p531_p12, %p530_p11 }
  0x4a   :  { %285 = vmatprep.subr.bf16.mxu0 %v423_v10 }
  0x4b   :  { %p533_p0 = pnand %p532_p13, %p526_p10 }
  0x4d   :  { %286 = vmatpush1.bf16.msra.mxu0 %v425_v11 }
  0x4e   :  { %287 = vmatprep.subr.bf16.mxu0 %v426_v12 }
  0x51   :  { %288 = vmatpush1.bf16.msra.mxu0 %v428_v14 }
  0x52   :  { %289 = vmatprep.subr.bf16.mxu0 %v429_v15 }
  0x55   :  { %290 = vmatpush1.bf16.msra.mxu0 %v431_v16 }
  0x56   :  { %291 = vmatprep.subr.bf16.mxu0 %v432_v17 }
  0x59   :  { %292 = vmatpush1.bf16.msra.mxu0 %v434_v18 }
  0x5a   :  { %293 = vmatprep.subr.bf16.mxu0 %v435_v19 }
  0x5d   :  { %294 = vmatpush1.bf16.msra.mxu0 %v437_v20 }
  0x5e   :  { %295 = vmatprep.subr.bf16.mxu0 %v438_v21 }
  0x61   :  { %296 = vmatpush1.bf16.msra.mxu0 %v440_v22 }
  0x62   :  { %297 = vmatprep.subr.bf16.mxu0 %v441_v23 }
  0x65   :  { %298 = vmatpush1.bf16.msra.mxu0 %v443_v24 }
  0x66   :  { %299 = vmatprep.subr.bf16.mxu0 %v444_v25 }
  0x69   :  { %300 = vmatpush1.bf16.msra.mxu0 %v446_v26 }
  0x6a   :  { %301 = vmatprep.subr.bf16.mxu0 %v447_v27 }
  0x6d   :  { %302 = vmatpush1.bf16.msra.mxu0 %v449_v28 }
  0x6e   :  { %303 = vmatprep.subr.bf16.mxu0 %v450_v29 }
  0x71   :  { %304 = vmatpush1.bf16.msra.mxu0 %v452_v30 }
  0x72   :  { %305 = vmatprep.subr.bf16.mxu0 %v453_v31 }
  0x75   :  { %306 = vmatpush1.bf16.msra.mxu0 %v455_v32 }
  0x78   :  { %308 = vmatmul.mubr.bf16.vlgmr.msra.gmra.mrb[0].mxu0 %v456_v33 }
 0x14b   :  { %v309_v41 = vpop.f32.mrb[0].mxu0 }
 0x14c   :  { %v310_v42 = vadd.f32 %v309_v41, %v98_v39  ;;  %v311_v43 = vpop.f32.mrb[1].mxu0 }
 0x14d   :  { %v312_v45 = vadd.f32 %v311_v43, %v102_v40  ;;  %v313_v46 = vpop.f32.mrb[2].mxu0 }
 0x14e   :  { %v318_v47 = vmax.f32 %v310_v42, 0.0  ;;  %v314_v49 = vadd.f32 %v313_v46, %v98_v39  ;;  %v315_v50 = vpop.f32.mrb[3].mxu0 }
 0x14f   :  { %v319_v51 = vmax.f32 %v312_v45, 0.0  ;;  %v316_v53 = vadd.f32 %v315_v50, %v102_v40 }
 0x150   :  { %v326_v54 = vmul.f32 %v322_v44, %v318_v47  ;;  %v320_v55 = vmax.f32 %v314_v49, 0.0 }
 0x151   :  { %v327_v57 = vmul.f32 %v323_v48, %v319_v51  ;;  %v321_v58 = vmax.f32 %v316_v53, 0.0 }
 0x152   :  { %v328_v59 = vmul.f32 %v324_v52, %v320_v55 }
 0x153   :  { %v398_v60 = vpack.c.bf16 %v327_v57, %v326_v54  ;;  %v329_v61 = vmul.f32 %v325_v56, %v321_v58 }
 0x155   :  { %342 = vst [vmem:[#allocation8] sm:$0xff] %v398_v60  ;;  %v399_v62 = vpack.c.bf16 %v329_v61, %v328_v59 }
 0x157   :  { %343 = vst [vmem:[#allocation8 + $0x8] sm:$0xff] %v399_v62 }
 0x158   :  { %536 = shalt.err (!%p533_p0)
}
 0x159   :  { %s537_s8 = scalar_lea.hbm %s657_s4, 256 }
 0x15a   :  { %p538_p1 = scmp.ne.s32.totalorder %s657_s4, %s537_s8  ;;  %p541_p2 = scmp.lt.u32.totalorder %s537_s8, %s657_s4 }
 0x15c   :  { %p543_p3 = pnand %p541_p2, %p538_p1 }
 0x15e   :  { %546 = shalt.err (!%p543_p3)
}
 0x15f   :  { %355 = dma.vmem_to_hbm [thread:$0]  %s350_s30, 256, %s657_s4, [#allocation4], %s555_s27, %s555_s27, %s556_s28  }
 0x160   :  { %551 = dma.done.wait [#allocation4], 256  }
 0x161   :  { %552 = vsyncadd [#allocation4], 4294967040 }
 0x162   :  { %359 = vsyncpa [#allocation3], 1 }
 0x163   :  { %360 = vsyncpa [#allocation6], 1 }
 0x164   :  { %361 = vsyncpa [#allocation4], 1 }

</bundles_post_ra>
